<compile_context>
chip_gen: v6e
topology: v6e:2x2x1
jax: 0.10.0
libtpu: 0.0.40
codegen_flags: <defaults>
</compile_context>

<pallas_src>
import jax
import jax.numpy as jnp
from jax import lax
from jax.experimental import pallas as pl
from jax.experimental.pallas import tpu as pltpu

NEG = -1.0e30   # finite stand-in for -inf (keeps exp/log NaN-free on TPU)
SUB = 8         # samples packed per grid step (sublane dimension of a vreg)


def _ctc_alpha_kernel(blkmax_ref, g_ref, skipb_ref, ilen_ref, tlen_ref, out_ref):
    # blkmax_ref : SMEM (NB,) int32   max input length over the 8 samples of this block
    # g_ref      : (T, 8, Lpad) f32   g[t, b, s] = log_probs[t, sample_b, ext_target[b, s]]
    #                                 (NEG in lanes >= per-sample extended length)
    # skipb_ref  : (8, Lpad) f32      0 where the "s-2 skip" transition is legal, else NEG
    # ilen_ref   : (8, 1) int32       per-sample input lengths
    # tlen_ref   : (8, 1) int32       per-sample target lengths
    # out_ref    : (8, 128) f32       per-sample loss broadcast across lanes
    nb = pl.program_id(0)
    T, B, Lpad = g_ref.shape

    lane = lax.broadcasted_iota(jnp.int32, (B, Lpad), 1)
    ilen = ilen_ref[...]                      # (8, 1)
    tlen = tlen_ref[...]                      # (8, 1)
    skip_bias = skipb_ref[...]                # (8, Lpad)
    t_max = blkmax_ref[nb]                    # scalar loop bound for this block

    # alpha_0: only s=0 (blank) and s=1 (first label, if any) are reachable.
    g0 = g_ref[0]                             # (8, Lpad)
    init_limit = jnp.where(tlen > 0, 2, 1)    # (8, 1)
    alpha0 = jnp.where(lane < init_limit, g0, NEG)

    def lse3(a, b, c):
        m = jnp.maximum(jnp.maximum(a, b), c)
        return m + jnp.log(jnp.exp(a - m) + jnp.exp(b - m) + jnp.exp(c - m))

    def body(t, alpha):
        g_t = g_ref[t]                                        # (8, Lpad) contiguous tile
        a1 = pltpu.roll(alpha, shift=1, axis=1)               # wrap brings NEG into lane 0
        a2 = pltpu.roll(alpha, shift=2, axis=1) + skip_bias   # NEG where skip is illegal
        new_alpha = g_t + lse3(alpha, a1, a2)
        new_alpha = jnp.maximum(new_alpha, NEG)               # keep pad lanes bounded
        # freeze samples whose input length is already exhausted (ragged batch)
        return jnp.where(t < ilen, new_alpha, alpha)

    alpha = lax.fori_loop(1, t_max, body, alpha0)

    # loss_b = -logsumexp(alpha[2*tl], alpha[2*tl - 1])
    final_mask = (lane == 2 * tlen) | (lane == 2 * tlen - 1)
    vals = jnp.where(final_mask, alpha, NEG)
    m = jnp.max(vals, axis=1, keepdims=True)
    lse = m + jnp.log(jnp.sum(jnp.exp(vals - m), axis=1, keepdims=True))
    nll = -lse
    nll = jnp.where(nll > 1.0e29, 0.0, nll)                   # zero_infinity=True
    loss = nll / jnp.maximum(tlen, 1).astype(jnp.float32)     # per-sample part of 'mean'
    out_ref[...] = jnp.broadcast_to(loss, (B, 128))


def ctc_loss_pallas(log_probs, targets, input_lengths, target_lengths, blank=0):
    """Matches torch.nn.CTCLoss(blank=0, reduction='mean', zero_infinity=True)."""
    T, N, C = log_probs.shape
    S = targets.shape[1]
    L_ext = 2 * S + 1
    Lpad = max(128, int(pl.cdiv(L_ext, 128)) * 128)
    NB = int(pl.cdiv(N, SUB))
    N_pad = NB * SUB

    targets = targets.astype(jnp.int32)
    input_lengths = input_lengths.astype(jnp.int32)
    target_lengths = target_lengths.astype(jnp.int32)

    # extended (blank-interleaved) targets: [b, t1, b, t2, ..., tS, b]
    ext = jnp.full((N, L_ext), blank, dtype=jnp.int32).at[:, 1::2].set(targets)

    # glue: gather per-extended-symbol log-probs (the DP recursion itself is in-kernel).
    # TODO(synk): for C << Lpad this gather could move in-kernel as a one-hot MXU matmul
    # on the raw (8, T, C) slab to cut HBM traffic by ~Lpad/C; kept in XLA here.
    lp_ntc = jnp.transpose(log_probs, (1, 0, 2)).astype(jnp.float32)        # (N, T, C)
    idx = jnp.broadcast_to(ext[:, None, :], (N, T, L_ext))
    g = jnp.take_along_axis(lp_ntc, idx, axis=2)                            # (N, T, L_ext)

    # NEG-out lanes beyond each sample's own extended length so the in-kernel rolls can
    # rely on wrap-around feeding NEG (no per-step lane masks needed).
    lane = jnp.arange(L_ext, dtype=jnp.int32)
    valid = lane[None, None, :] < (2 * target_lengths + 1)[:, None, None]
    g = jnp.where(valid, g, NEG)
    g = jnp.pad(g, ((0, N_pad - N), (0, 0), (0, Lpad - L_ext)), constant_values=NEG)
    # (NB, T, 8, Lpad): g_block[t] is one contiguous (8, Lpad) sublane tile per DP step.
    g = g.reshape(NB, SUB, T, Lpad).transpose(0, 2, 1, 3)

    # additive skip bias: 0 at odd s >= 3 where the label differs from the label 2 back,
    # NEG elsewhere (including lanes 0..2 and all padding).
    skip = jnp.zeros((N, L_ext), bool)
    if S >= 2:
        skip = skip.at[:, 3::2].set(targets[:, 1:] != targets[:, :-1])
    skip_bias = jnp.where(skip, 0.0, NEG).astype(jnp.float32)
    skip_bias = jnp.pad(skip_bias, ((0, N_pad - N), (0, Lpad - L_ext)),
                        constant_values=NEG)                                # (N_pad, Lpad)

    il = jnp.pad(input_lengths, (0, N_pad - N))
    tl = jnp.pad(target_lengths, (0, N_pad - N))
    il_col = il.reshape(N_pad, 1)
    tl_col = tl.reshape(N_pad, 1)
    blk_max = jnp.max(il.reshape(NB, SUB), axis=1).astype(jnp.int32)        # (NB,)

    grid_spec = pltpu.PrefetchScalarGridSpec(
        num_scalar_prefetch=1,
        grid=(NB,),
        in_specs=[
            pl.BlockSpec((None, T, SUB, Lpad), lambda nb, mx: (nb, 0, 0, 0)),
            pl.BlockSpec((SUB, Lpad), lambda nb, mx: (nb, 0)),
            pl.BlockSpec((SUB, 1), lambda nb, mx: (nb, 0)),
            pl.BlockSpec((SUB, 1), lambda nb, mx: (nb, 0)),
        ],
        out_specs=pl.BlockSpec((None, SUB, 128), lambda nb, mx: (nb, 0, 0)),
    )

    # VMEM budget: the auto-pipeline double-buffers the (T, 8, Lpad) gathered block.
    # Raise the scoped limit only when the tile is large; for very long T on v7x
    # (64 MiB VMEM) a T-chunk grid axis with a carried alpha scratch would be used instead.
    g_block_bytes = 2 * T * SUB * Lpad * 4
    vmem_limit = None
    if g_block_bytes > 24 * 1024 * 1024:
        vmem_limit = min(g_block_bytes + (8 << 20), 100 * 1024 * 1024)

    per_sample = pl.pallas_call(
        _ctc_alpha_kernel,
        out_shape=jax.ShapeDtypeStruct((NB, SUB, 128), jnp.float32),
        grid_spec=grid_spec,
        compiler_params=pltpu.CompilerParams(
            dimension_semantics=("parallel",),
            vmem_limit_bytes=vmem_limit,
        ),
    )(blk_max, g, skip_bias, il_col, tl_col)

    losses = per_sample[:, :, 0].reshape(N_pad)[:N]
    return jnp.mean(losses)


def _ctc_loss_ref(log_probs, targets, input_lengths, target_lengths, blank=0):
    """Pure-JAX reference (same semantics), used to validate the kernel."""
    T, N, C = log_probs.shape
    S = targets.shape[1]
    L = 2 * S + 1
    targets = targets.astype(jnp.int32)
    ext = jnp.full((N, L), blank, jnp.int32).at[:, 1::2].set(targets)
    lp = jnp.transpose(log_probs, (1, 0, 2)).astype(jnp.float32)
    g = jnp.take_along_axis(lp, jnp.broadcast_to(ext[:, None, :], (N, T, L)), axis=2)
    skip = jnp.zeros((N, L), bool)
    if S >= 2:
        skip = skip.at[:, 3::2].set(targets[:, 1:] != targets[:, :-1])
    iota = jnp.arange(L)[None, :]
    tl = target_lengths[:, None]
    il = input_lengths[:, None]
    alpha = jnp.where(iota < jnp.where(tl > 0, 2, 1), g[:, 0, :], NEG)

    def lse3(a, b, c):
        m = jnp.maximum(jnp.maximum(a, b), c)
        return m + jnp.log(jnp.exp(a - m) + jnp.exp(b - m) + jnp.exp(c - m))

    def step(alpha, xs):
        t, g_t = xs
        a1 = jnp.where(iota >= 1, jnp.roll(alpha, 1, axis=1), NEG)
        a2 = jnp.where((iota >= 2) & skip, jnp.roll(alpha, 2, axis=1), NEG)
        new = g_t + lse3(alpha, a1, a2)
        return jnp.where(t < il, new, alpha), None

    g_seq = jnp.moveaxis(g, 1, 0)[1:]                       # (T-1, N, L)
    alpha, _ = lax.scan(step, alpha, (jnp.arange(1, T), g_seq))
    mask = (iota == 2 * tl) | (iota == 2 * tl - 1)
    vals = jnp.where(mask, alpha, NEG)
    m = jnp.max(vals, axis=1)
    nll = -(m + jnp.log(jnp.sum(jnp.exp(vals - m[:, None]), axis=1)))
    nll = jnp.where(nll > 1e29, 0.0, nll)
    return jnp.mean(nll / jnp.maximum(target_lengths, 1).astype(jnp.float32))


if __name__ == "__main__":
    # TODO(synk): only the 'builtin' branch of CTCLoss is implemented; 'warp' CTC is the
    # same math with a different backend and is not separately reproduced.
    key = jax.random.PRNGKey(0)
    T, N, C, S = 16, 4, 12, 5
    k1, k2 = jax.random.split(key)
    logits = jax.random.normal(k1, (T, N, C), dtype=jnp.float32)
    log_probs = jax.nn.log_softmax(logits, axis=-1)          # torch CTC expects log-probs
    targets = jax.random.randint(k2, (N, S), 1, C)           # labels in [1, C), blank=0
    targets = targets.at[1, 2].set(targets[1, 1])            # force a repeated label (skip path)
    input_lengths = jnp.array([16, 14, 16, 12], dtype=jnp.int32)
    target_lengths = jnp.array([5, 3, 4, 2], dtype=jnp.int32)

    loss = ctc_loss_pallas(log_probs, targets, input_lengths, target_lengths)
    loss = jax.block_until_ready(loss)

    ref = _ctc_loss_ref(log_probs, targets, input_lengths, target_lengths)
    assert bool(jnp.isfinite(loss)), loss
    assert abs(float(loss) - float(ref)) < 1e-3 * max(1.0, abs(float(ref))), (float(loss), float(ref))
    print("KERNEL_OK")
</pallas_src>

<mosaic_0001>
module attributes {stable_mosaic.version = 11 : i64} {
  func.func @_ctc_alpha_kernel(%arg0: i32, %arg1: memref<1xi32, #tpu.memory_space<smem>>, %arg2: memref<1x16x8x128xf32, #tpu.memory_space<vmem>>, %arg3: memref<8x128xf32, #tpu.memory_space<vmem>>, %arg4: memref<8x1xi32, #tpu.memory_space<vmem>>, %arg5: memref<8x1xi32, #tpu.memory_space<vmem>>, %arg6: memref<1x8x128xf32, #tpu.memory_space<vmem>>) attributes {dimension_semantics = [#tpu.dimension_semantics<parallel>], iteration_bounds = array<i64: 1>, scalar_prefetch = 1 : i64, scratch_operands = 0 : i64, tpu.core_type = #tpu.core_type<tc>, window_params = [{transform_indices = @transform_0, window_bounds = array<i64: 1, 16, 8, 128>}, {transform_indices = @transform_1, window_bounds = array<i64: 8, 128>}, {transform_indices = @transform_2, window_bounds = array<i64: 8, 1>}, {transform_indices = @transform_3, window_bounds = array<i64: 8, 1>}, {transform_indices = @transform_4, window_bounds = array<i64: 1, 8, 128>}]} {
    %0 = tpu.iota {dimensions = array<i32: 1>} : vector<8x128xi32>
    %c0 = arith.constant 0 : index
    %c0_0 = arith.constant 0 : index
    %1 = vector.load %arg4[%c0, %c0_0] : memref<8x1xi32, #tpu.memory_space<vmem>>, vector<8x1xi32>
    %c0_1 = arith.constant 0 : index
    %c0_2 = arith.constant 0 : index
    %2 = vector.load %arg5[%c0_1, %c0_2] : memref<8x1xi32, #tpu.memory_space<vmem>>, vector<8x1xi32>
    %c0_3 = arith.constant 0 : index
    %c0_4 = arith.constant 0 : index
    %3 = vector.load %arg3[%c0_3, %c0_4] : memref<8x128xf32, #tpu.memory_space<vmem>>, vector<8x128xf32>
    %4 = arith.index_cast %arg0 : i32 to index
    %5 = memref.load %arg1[%4] : memref<1xi32, #tpu.memory_space<smem>>
    %c0_5 = arith.constant 0 : index
    %c0_6 = arith.constant 0 : index
    %c0_7 = arith.constant 0 : index
    %c0_8 = arith.constant 0 : index
    %6 = vector.load %arg2[%c0_5, %c0_6, %c0_7, %c0_8] : memref<1x16x8x128xf32, #tpu.memory_space<vmem>>, vector<1x1x8x128xf32>
    %7 = vector.shape_cast %6 : vector<1x1x8x128xf32> to vector<8x128xf32>
    %c0_i32 = arith.constant 0 : i32
    %8 = vector.broadcast %c0_i32 : i32 to vector<8x1xi32>
    %9 = arith.cmpi sgt, %2, %8 : vector<8x1xi32>
    %c2_i32 = arith.constant 2 : i32
    %c1_i32 = arith.constant 1 : i32
    %10 = vector.broadcast %c2_i32 : i32 to vector<8x1xi32>
    %11 = vector.broadcast %c1_i32 : i32 to vector<8x1xi32>
    %12 = arith.select %9, %10, %11 : vector<8x1xi1>, vector<8x1xi32>
    %13 = vector.broadcast %12 : vector<8x1xi32> to vector<8x128xi32>
    %14 = arith.cmpi slt, %0, %13 : vector<8x128xi32>
    %cst = arith.constant -1.000000e+30 : f32
    %15 = vector.broadcast %cst : f32 to vector<8x128xf32>
    %16 = arith.select %14, %7, %15 : vector<8x128xi1>, vector<8x128xf32>
    %c1_i32_9 = arith.constant 1 : i32
    %17 = arith.subi %5, %c1_i32_9 : i32
    %18 = arith.addi %c1_i32_9, %17 : i32
    %c1_i32_10 = arith.constant 1 : i32
    %19 = scf.for %arg7 = %c1_i32_9 to %18 step %c1_i32_10 iter_args(%arg8 = %16) -> (vector<8x128xf32>)  : i32 {
      %c0_24 = arith.constant 0 : index
      %57 = arith.index_cast %arg7 : i32 to index
      %c0_25 = arith.constant 0 : index
      %c0_26 = arith.constant 0 : index
      %58 = vector.load %arg2[%c0_24, %57, %c0_25, %c0_26] : memref<1x16x8x128xf32, #tpu.memory_space<vmem>>, vector<1x1x8x128xf32>
      %59 = vector.shape_cast %58 : vector<1x1x8x128xf32> to vector<8x128xf32>
      %c1_i32_27 = arith.constant 1 : i32
      %60 = tpu.dynamic_rotate %arg8 by %c1_i32_27 dim 1 : vector<8x128xf32>, i32 -> vector<8x128xf32>
      %c2_i32_28 = arith.constant 2 : i32
      %61 = tpu.dynamic_rotate %arg8 by %c2_i32_28 dim 1 : vector<8x128xf32>, i32 -> vector<8x128xf32>
      %62 = arith.addf %61, %3 : vector<8x128xf32>
      %63 = arith.maximumf %arg8, %60 : vector<8x128xf32>
      %64 = arith.maximumf %63, %62 : vector<8x128xf32>
      %65 = arith.subf %arg8, %64 : vector<8x128xf32>
      %66 = math.exp %65 : vector<8x128xf32>
      %67 = arith.subf %60, %64 : vector<8x128xf32>
      %68 = math.exp %67 : vector<8x128xf32>
      %69 = arith.addf %66, %68 : vector<8x128xf32>
      %70 = arith.subf %62, %64 : vector<8x128xf32>
      %71 = math.exp %70 : vector<8x128xf32>
      %72 = arith.addf %69, %71 : vector<8x128xf32>
      %73 = math.log %72 : vector<8x128xf32>
      %74 = arith.addf %64, %73 : vector<8x128xf32>
      %75 = arith.addf %59, %74 : vector<8x128xf32>
      %cst_29 = arith.constant -1.000000e+30 : f32
      %76 = vector.broadcast %cst_29 : f32 to vector<8x128xf32>
      %77 = arith.maximumf %75, %76 : vector<8x128xf32>
      %78 = vector.broadcast %arg7 : i32 to vector<8x1xi32>
      %79 = arith.cmpi slt, %78, %1 : vector<8x1xi32>
      %80 = vector.shape_cast %79 : vector<8x1xi1> to vector<8x1xi1>
      %81 = vector.broadcast %80 : vector<8x1xi1> to vector<8x128xi1>
      %82 = arith.select %81, %77, %arg8 : vector<8x128xi1>, vector<8x128xf32>
      scf.yield %82 : vector<8x128xf32>
    }
    %c2_i32_11 = arith.constant 2 : i32
    %20 = vector.broadcast %c2_i32_11 : i32 to vector<8x1xi32>
    %21 = arith.muli %20, %2 : vector<8x1xi32>
    %22 = vector.broadcast %21 : vector<8x1xi32> to vector<8x128xi32>
    %23 = arith.cmpi eq, %0, %22 : vector<8x128xi32>
    %c2_i32_12 = arith.constant 2 : i32
    %24 = vector.broadcast %c2_i32_12 : i32 to vector<8x1xi32>
    %25 = arith.muli %24, %2 : vector<8x1xi32>
    %c1_i32_13 = arith.constant 1 : i32
    %26 = vector.broadcast %c1_i32_13 : i32 to vector<8x1xi32>
    %27 = arith.subi %25, %26 : vector<8x1xi32>
    %28 = vector.broadcast %27 : vector<8x1xi32> to vector<8x128xi32>
    %29 = arith.cmpi eq, %0, %28 : vector<8x128xi32>
    %30 = arith.ori %23, %29 : vector<8x128xi1>
    %cst_14 = arith.constant -1.000000e+30 : f32
    %31 = vector.broadcast %cst_14 : f32 to vector<8x128xf32>
    %32 = arith.select %30, %19, %31 : vector<8x128xi1>, vector<8x128xf32>
    %cst_15 = arith.constant dense<0xFF800000> : vector<8xf32>
    %33 = vector.multi_reduction <maximumf>, %32, %cst_15 [1] : vector<8x128xf32> to vector<8xf32>
    %34 = vector.shape_cast %33 : vector<8xf32> to vector<8x1xf32>
    %35 = vector.broadcast %34 : vector<8x1xf32> to vector<8x128xf32>
    %36 = arith.subf %32, %35 : vector<8x128xf32>
    %37 = math.exp %36 : vector<8x128xf32>
    %cst_16 = arith.constant dense<0.000000e+00> : vector<8xf32>
    %38 = vector.multi_reduction <add>, %37, %cst_16 [1] : vector<8x128xf32> to vector<8xf32>
    %39 = vector.shape_cast %38 : vector<8xf32> to vector<8x1xf32>
    %40 = math.log %39 : vector<8x1xf32>
    %41 = arith.addf %34, %40 : vector<8x1xf32>
    %cst_17 = arith.constant 0.000000e+00 : f32
    %42 = vector.broadcast %cst_17 : f32 to vector<8x1xf32>
    %43 = arith.subf %42, %41 : vector<8x1xf32>
    %cst_18 = arith.constant 1.000000e+29 : f32
    %44 = vector.broadcast %cst_18 : f32 to vector<8x1xf32>
    %45 = arith.cmpf ogt, %43, %44 : vector<8x1xf32>
    %cst_19 = arith.constant 0.000000e+00 : f32
    %46 = vector.broadcast %cst_19 : f32 to vector<8x1xf32>
    %47 = arith.select %45, %46, %43 : vector<8x1xi1>, vector<8x1xf32>
    %c1_i32_20 = arith.constant 1 : i32
    %48 = vector.broadcast %c1_i32_20 : i32 to vector<8x1xi32>
    %49 = arith.maxsi %2, %48 : vector<8x1xi32>
    %50 = arith.sitofp %49 : vector<8x1xi32> to vector<8x1xf32>
    %51 = arith.divf %47, %50 : vector<8x1xf32>
    %52 = vector.shape_cast %51 : vector<8x1xf32> to vector<8x1xf32>
    %53 = vector.broadcast %52 : vector<8x1xf32> to vector<8x128xf32>
    %c0_21 = arith.constant 0 : index
    %c0_22 = arith.constant 0 : index
    %c0_23 = arith.constant 0 : index
    %54 = vector.load %arg6[%c0_21, %c0_22, %c0_23] : memref<1x8x128xf32, #tpu.memory_space<vmem>>, vector<1x8x128xf32>
    %55 = vector.shape_cast %54 : vector<1x8x128xf32> to vector<8x128xf32>
    %56 = vector.shape_cast %53 : vector<8x128xf32> to vector<1x8x128xf32>
    tpu.vector_store %arg6[%c0_21, %c0_22, %c0_23], %56 {strides = array<i32>} : memref<1x8x128xf32, #tpu.memory_space<vmem>>, vector<1x8x128xf32>,
    return
  }
  func.func @transform_0(%arg0: i32, %arg1: memref<1xi32, #tpu.memory_space<smem>>) -> (i32, i32, i32, i32) {
    %c0_i32 = arith.constant 0 : i32
    %c0_i32_0 = arith.constant 0 : i32
    %c0_i32_1 = arith.constant 0 : i32
    %c0_i32_2 = arith.constant 0 : i32
    return %arg0, %c0_i32, %c0_i32_0, %c0_i32_1 : i32, i32, i32, i32
  }
  func.func @transform_1(%arg0: i32, %arg1: memref<1xi32, #tpu.memory_space<smem>>) -> (i32, i32) {
    %c0_i32 = arith.constant 0 : i32
    %c0_i32_0 = arith.constant 0 : i32
    return %arg0, %c0_i32 : i32, i32
  }
  func.func @transform_2(%arg0: i32, %arg1: memref<1xi32, #tpu.memory_space<smem>>) -> (i32, i32) {
    %c0_i32 = arith.constant 0 : i32
    %c0_i32_0 = arith.constant 0 : i32
    return %arg0, %c0_i32 : i32, i32
  }
  func.func @transform_3(%arg0: i32, %arg1: memref<1xi32, #tpu.memory_space<smem>>) -> (i32, i32) {
    %c0_i32 = arith.constant 0 : i32
    %c0_i32_0 = arith.constant 0 : i32
    return %arg0, %c0_i32 : i32, i32
  }
  func.func @transform_4(%arg0: i32, %arg1: memref<1xi32, #tpu.memory_space<smem>>) -> (i32, i32, i32) {
    %c0_i32 = arith.constant 0 : i32
    %c0_i32_0 = arith.constant 0 : i32
    %c0_i32_1 = arith.constant 0 : i32
    return %arg0, %c0_i32, %c0_i32_0 : i32, i32, i32
  }
}

</mosaic_0001>

<bundles_post_ra>
// kernel: tpu_custom_call.1
= control target key start
LH: loop header
LB: loop body
LE: loop exit
PB: predicated region body
PF: predicated region fallthrough
CT: control target
= control target key end

     0   :  { %11 = vsyncpa [#allocation5], 0  ;;  %s361_s0 = inlined_call_operand.<no memory space> [shape: s32[1], index: 0, kind: input, shape index: {}]   ;;  %s362_s1 = inlined_call_operand.hbm [shape: f32[1,16,8,128], index: 1, kind: input, shape index: {}]   ;;  %s363_s2 = inlined_call_operand.vmem [shape: f32[8,128], index: 2, kind: input, shape index: {}]   ;;  %s364_s3 = inlined_call_operand.vmem [shape: s32[8,1], index: 3, kind: input, shape index: {}]   ;;  %s365_s4 = inlined_call_operand.vmem [shape: s32[8,1], index: 4, kind: input, shape index: {}]   ;;  %s366_s5 = inlined_call_operand.hbm [shape: f32[1,8,128], index: 5, kind: output, shape index: {}]  }
   0x1   :  { %12 = vsyncpa [#allocation6], 0  ;;  %s272_s18 = smov [#allocation4]  }
   0x2   :  { %s18_s19 = sshll.u32 %s272_s18, 4  ;;  %s19_s19 = int_to_ptr.vmem [resolvable:$true] %s18_s19 }
   0x3   :  { %s212_s20 = scalar_lea.vmem %s19_s19, 2048  ;;  %p217_p1 = scmp.lt.s32.totalorder %s19_s19, %s19_s19 }
   0x4   :  { %p213_p0 = scmp.ne.s32.totalorder %s19_s19, %s212_s20  ;;  %p218_p2 = scmp.lt.s32.totalorder %s212_s20, %s212_s20 }
   0x6   :  { %p219_p3 = por %p218_p2, %p217_p1 }
   0x8   :  { %p220_p4 = pnand %p219_p3, %p213_p0 }
   0xa   :  { %223 = shalt.err (!%p220_p4)
}
   0xb   :  { %s273_s21 = smov 128   ;;  %s274_s22 = smov 8  }
   0xc   :  { %24 = dma.hbm_to_vmem [thread:$0]  %s362_s1, 2048, %s19_s19, [#allocation5], %s273_s21, %s273_s21, %s274_s22  }
   0xd   :  { %256 = dma.done.wait [#allocation5], 2048  }
   0xe   :  { %257 = vsyncadd [#allocation5], 4294965248  ;;  %v275_v0 = vmov 0   ;;  %v318_v1 = vld [vmem:[%s364_s3] sm:$0xff]  ;;  %v276_v4 = vmov 1   ;;  %v34_v6 = vlaneseq  ;;  %p150_p5 = scmp.le.s32.totalorder %s361_s0, 1 }
   0xf   :  { %186 = vset.pattern.permute.xlu0 %v275_v0  ;;  %v323_v2 = vld [vmem:[%s363_s2] sm:$0xff]  ;;  %s337_s3 = smov (!%p150_p5), 1  }
  0x10   :  { %v328_v3 = vld [vmem:[%s365_s4] sm:$0xff]  ;;  %v331_v7 = vand.u32 127, %v34_v6 }
  0x11   :  { %vm41_vm0 = vcmp.gt.s32.totalorder %v328_v3, 0  ;;  %v40_v8 = vld [vmem:[#allocation4] sm:$0xff] }
  0x12   :  { %v42_v5 = vsel %vm41_vm0, 2, %v276_v4 }
  0x13   :  { %44 = vperm.xlu0 %186, %v42_v5  }
  0x8d   :  { %145 = sbr.rel (%p150_p5) target bundleno = 319 (0x13f), region = 42 }
  0x8e   :  { %v45_v9 = vpop.permute.xlu0 %44 }
  0x8f   :  { %vm46_vm1 = vcmp.lt.s32.totalorder %v331_v7, %v45_v9 }
  0x90   :  { %v47_v10 = vsel %vm46_vm1, %v40_v8, -1e+30  }
  0x91   :  { %v268_v11 = vmov %v47_v10  }
  0x92   :  { %v260_v12 = vmov %v47_v10  }
  0x93 LB: > { %v277_v13 = vmov 0   ;;  %s278_s4 = smov 1   ;;  %v81_v14 = vstv %s266_s3  ;;  %s279_s6 = smov 2   ;;  %s266_s3 = sphi %s337_s3, %s51_s3   ;;  %v262_v12 = vphi %v260_v12, %v261_v12  }
  0x94   : > { %187 = vset.pattern.permute.xlu1 %v277_v13  ;;  %188 = vset.pattern.permute.xlu0 %v277_v13  ;;  %vm82_vm2 = vcmp.lt.s32.totalorder %v81_v14, %v318_v1  ;;  %s151_s7 = sshll.u32 %s266_s3, 3  ;;  %s51_s3 = sadd.s32 1, %s266_s3  }
  0x95   : > { %58 = vrot.lane.b32.xlu0 %v262_v12, %s278_s4  ;;  %v83_v15 = vsel %vm82_vm2, 1, %v277_v13  ;;  %s56_s8 = scalar_lea.vmem [#allocation4], %s151_s7  ;;  %p50_p6 = scmp.ge.s32.totalorder %s51_s3, %s361_s0 }
  0x96   : > { %85 = vperm.xlu1 %187, %v83_v15   ;;  %v57_v34 = vld [vmem:[%s56_s8] sm:$0xff] }
  0x99   : > { %60 = vrot.lane.b32.xlu0 %v262_v12, %s279_s6 }
 0x107   : > { %v59_v16 = vpop.permute.xlu0 %58 }
 0x108   : > { %v63_v18 = vmax.f32 %v262_v12, %v59_v16 }
 0x10b   : > { %v61_v17 = vpop.permute.xlu0 %60 }
 0x10c   : > { %v62_v19 = vadd.f32 %v61_v17, %v323_v2 }
 0x10e   : > { %v64_v20 = vmax.f32 %v63_v18, %v62_v19 }
 0x110   : > { %v65_v21 = vsub.f32 %v262_v12, %v64_v20  ;;  %v68_v22 = vsub.f32 %v59_v16, %v64_v20  ;;  %v72_v23 = vsub.f32 %v62_v19, %v64_v20 }
 0x111   : > { %v86_v35 = vpop.permute.xlu1 %85 }
 0x112   : > { %v66_v24 = vmul.f32 1.442695, %v65_v21  ;;  %v69_v25 = vmul.f32 1.442695, %v68_v22  ;;  %v73_v26 = vmul.f32 1.442695, %v72_v23 }
 0x113   : > { %vm87_vm3 = vcmp.eq.s32.totalorder %v86_v35, 1 }
 0x114   : > { %189 = vpow2.f32 %v66_v24 }
 0x115   : > { %191 = vpow2.f32 %v69_v25 }
 0x116   : > { %193 = vpow2.f32 %v73_v26 }
 0x121   : > { %v190_v27 = vpop.eup %189 }
 0x122   : > { %v192_v28 = vpop.eup %191 }
 0x123   : > { %v71_v29 = vadd.f32 %v192_v28, %v190_v27  ;;  %v194_v30 = vpop.eup %193 }
 0x125   : > { %v75_v31 = vadd.f32 %v194_v30, %v71_v29 }
 0x127   : > { %195 = vlog2.f32 %v75_v31 }
 0x134   : > { %v196_v32 = vpop.eup %195 }
 0x135   : > { %v77_v33 = vmul.f32 0.6931472, %v196_v32 }
 0x137   : > { %v78_v36 = vadd.f32 %v77_v33, %v64_v20 }
 0x139   : > { %v79_v37 = vadd.f32 %v78_v36, %v57_v34 }
 0x13a   :  { %53 = sbr.rel (!%p50_p6) target bundleno = 147 (0x93), region = 48 }
 0x13b   : > { %v80_v38 = vmax.f32 %v79_v37, -1e+30 }
 0x13d   : > { %v88_v39 = vsel %vm87_vm3, %v80_v38, %v262_v12  }
 0x13e   : > { %v261_v12 = vmov %v88_v39   ;;  %v269_v11 = vmov (%p50_p6), %v88_v39  }
 0x13f PF:  { %197 = vset.pattern.permute.xlu0 %v275_v0  ;;  %v89_v40 = vmul.u32 2, %v328_v3  ;;  %vm114_vm7 = vcmp.gt.s32.totalorder %v328_v3, 1  ;;  %s280_s0 = smov [#allocation7]   ;;  %v270_v11 = vphi %v268_v11, %v269_v11  }
 0x140   :  { %v115_v50 = vsel %vm114_vm7, %v328_v3, 1  ;;  %s131_s11 = sshll.u32 %s280_s0, 4  ;;  %s132_s11 = int_to_ptr.vmem [resolvable:$true] %s131_s11 }
 0x141   :  { %91 = vperm.xlu0 %197, %v89_v40   ;;  %v152_v41 = vadd.s32 4294967295, %v89_v40  ;;  %v116_v51 = vcvt.s32.f32 %v115_v50  ;;  %s224_s12 = scalar_lea.vmem %s132_s11, 128  ;;  %p229_p8 = scmp.lt.s32.totalorder %s132_s11, %s132_s11 }
 0x142   :  { %p225_p7 = scmp.ne.s32.totalorder %s132_s11, %s224_s12  ;;  %p230_p9 = scmp.lt.s32.totalorder %s224_s12, %s224_s12 }
 0x144   :  { %p231_p10 = por %p230_p9, %p229_p8 }
 0x145   :  { %96 = vperm.xlu0 %197, %v152_v41  }
 0x146   :  { %p232_p11 = pnand %p231_p10, %p225_p7 }
 0x1bc   :  { %v92_v42 = vpop.permute.xlu0 %91 }
 0x1bd   :  { %vm93_vm4 = vcmp.eq.s32.totalorder %v331_v7, %v92_v42 }
 0x1c0   :  { %v97_v43 = vpop.permute.xlu0 %96 }
 0x1c1   :  { %vm98_vm5 = vcmp.eq.s32.totalorder %v331_v7, %v97_v43 }
 0x1c2   :  { %vm99_vm6 = vmor %vm93_vm4, %vm98_vm5 }
 0x1c3   :  { %v100_v44 = vsel %vm99_vm6, %v270_v11, -1e+30 }
 0x1c4   :  { %101 = vmax.xlane.f32.xlu1 %v100_v44 }
 0x24d   :  { %v102_v45 = vpop.xlane.xlu1 %101 }
 0x24e   :  { %v103_v46 = vsub.f32 %v100_v44, %v102_v45 }
 0x250   :  { %v104_v47 = vmul.f32 1.442695, %v103_v46 }
 0x252   :  { %198 = vpow2.f32 %v104_v47 }
 0x25f   :  { %v199_v48 = vpop.eup %198 }
 0x260   :  { %106 = vadd.xlane.f32.xlu1 %v199_v48 }
 0x2e9   :  { %v107_v49 = vpop.xlane.xlu1 %106 }
 0x2ea   :  { %200 = vlog2.f32 %v107_v49 }
 0x2eb   :  { %202 = vrcp.f32 %v116_v51 }
 0x2f7   :  { %v201_v52 = vpop.eup %200 }
 0x2f8   :  { %v109_v53 = vmul.f32 0.6931472, %v201_v52  ;;  %v203_v56 = vpop.eup %202 }
 0x2fa   :  { %v110_v54 = vadd.f32 %v109_v53, %v102_v45 }
 0x2fc   :  { %v111_v55 = vsub.f32 0.0, %v110_v54 }
 0x2fe   :  { %vm112_vm8 = vcmp.gt.f32.partialorder %v111_v55, 1e+29 }
 0x2ff   :  { %v113_v57 = vsel %vm112_vm8, 0.0, %v111_v55 }
 0x300   :  { %v118_v58 = vmul.f32 %v203_v56, %v113_v57 }
 0x302   :  { %121 = vperm.xlu0 %197, %v118_v58  }
 0x37d   :  { %v122_v59 = vpop.permute.xlu0 %121 }
 0x37e   :  { %124 = vst [vmem:[#allocation7] sm:$0xff] %v122_v59 }
 0x37f   :  { %235 = shalt.err (!%p232_p11)
}
 0x380   :  { %134 = dma.vmem_to_hbm [thread:$0]  %s132_s11, 128, %s366_s5, [#allocation6]  }
 0x381   :  { %258 = dma.done.wait [#allocation6], 128  }
 0x382   :  { %259 = vsyncadd [#allocation6], 4294967168 }
 0x383   :  { %138 = vsyncpa [#allocation5], 1 }
 0x384   :  { %139 = vsyncpa [#allocation6], 1 }

</bundles_post_ra>
